<compile_context>
chip_gen: v6e
topology: v6e:2x2x1
jax: 0.10.0
libtpu: 0.0.40
codegen_flags: <defaults>
</compile_context>

<pallas_src>
import jax
import jax.numpy as jnp
from jax import lax
from jax.experimental import pallas as pl
from jax.experimental.pallas import tpu as pltpu

VOCAB = 16      # vocab_size
EMBED = 32      # embedding_dim (== RNN hidden size)
SEQ = 8         # sequence length
CONTEXT = 2     # context_dim (must be 2 given the forward's concat)
HID1 = 12       # fct1 output dim


def birnn_kernel(tok_ref, wep_ref, bpk_ref, wblk_ref, whead_ref, bhead_ref,
                 out_ref):
    S, V, E = SEQ, VOCAB, EMBED

    # In-kernel embedding lookup fused with the RNN input projections:
    #   u[t] = [ x_t @ wif + bf | x_t @ wib + bb ]        (S, 2E)
    tok = tok_ref[...]                                            # (S, 1) int32
    vocab_iota = lax.broadcasted_iota(jnp.int32, (S, V), 1)
    onehot = (tok == vocab_iota).astype(jnp.float32)              # (S, V)
    u = jnp.dot(onehot, wep_ref[...],
                preferred_element_type=jnp.float32) + bpk_ref[...]  # (S, 2E)

    wblk = wblk_ref[...]                                          # (2E, 2E)

    # Packed bidirectional recurrence, fully unrolled (S = 8 is static):
    #   h = [h_fwd | h_bwd];  h <- tanh(h @ blockdiag(whf, whb) + u_t)
    # where u_t takes its forward half from u[t] and backward half from u[S-1-t].
    lane = lax.broadcasted_iota(jnp.int32, (1, 2 * E), 1)
    is_fwd_lane = lane < E
    h = jnp.zeros((1, 2 * E), jnp.float32)
    for t in range(S):
        u_t = jnp.where(is_fwd_lane, u[t:t + 1, :], u[S - 1 - t:S - t, :])
        h = jnp.tanh(jnp.dot(h, wblk, preferred_element_type=jnp.float32) + u_t)

    # Fused head: tanh(fct2(fct1(h))) = tanh(h @ (W1 W2) + (b1 W2 + b2))
    out_ref[...] = jnp.tanh(
        jnp.dot(h, whead_ref[...], preferred_element_type=jnp.float32)
        + bhead_ref[...])


def init_params(key):
    ks = jax.random.split(key, 10)
    s = 0.1
    return {
        "embed": jax.random.normal(ks[0], (VOCAB, EMBED), jnp.float32) * s,
        # RNN weights pre-transposed to (in, out); biases pre-summed (b_ih + b_hh).
        "wif": jax.random.normal(ks[1], (EMBED, EMBED), jnp.float32) * s,
        "whf": jax.random.normal(ks[2], (EMBED, EMBED), jnp.float32) * s,
        "bf":  jax.random.normal(ks[3], (1, EMBED), jnp.float32) * s,
        "wib": jax.random.normal(ks[4], (EMBED, EMBED), jnp.float32) * s,
        "whb": jax.random.normal(ks[5], (EMBED, EMBED), jnp.float32) * s,
        "bb":  jax.random.normal(ks[6], (1, EMBED), jnp.float32) * s,
        "w1":  jax.random.normal(ks[7], (EMBED * CONTEXT, HID1), jnp.float32) * s,
        "b1":  jnp.zeros((1, HID1), jnp.float32),
        "w2":  jax.random.normal(ks[8], (HID1, VOCAB), jnp.float32) * s,
        "b2":  jnp.zeros((1, VOCAB), jnp.float32),
    }


def pack_params(p):
    """One-time weight packing; runs once at init, not on the per-call path."""
    zeros = jnp.zeros((EMBED, EMBED), jnp.float32)
    return {
        # Embedding fused with both input projections: (V, 2E)
        "wep": jnp.concatenate([p["embed"] @ p["wif"],
                                p["embed"] @ p["wib"]], axis=1),
        "bpk": jnp.concatenate([p["bf"], p["bb"]], axis=1),           # (1, 2E)
        # Block-diagonal recurrent weight: (2E, 2E)
        "wblk": jnp.block([[p["whf"], zeros], [zeros, p["whb"]]]),
        # Fused head (module has no nonlinearity between fct1 and fct2)
        "whead": p["w1"] @ p["w2"],                                   # (2E, V)
        "bhead": p["b1"] @ p["w2"] + p["b2"],                         # (1, V)
    }


@jax.jit
def bidirectional_rnn_forward(tokens, packed):
    tok2 = tokens.reshape(SEQ, 1).astype(jnp.int32)
    inputs = (tok2, packed["wep"], packed["bpk"], packed["wblk"],
              packed["whead"], packed["bhead"])
    return pl.pallas_call(
        birnn_kernel,
        out_shape=jax.ShapeDtypeStruct((1, VOCAB), jnp.float32),
        in_specs=[pl.BlockSpec(memory_space=pltpu.MemorySpace.VMEM)
                  for _ in inputs],
        out_specs=pl.BlockSpec(memory_space=pltpu.MemorySpace.VMEM),
    )(*inputs)


def reference_forward(tokens, p):
    # Plain-JAX reference with the ORIGINAL (unpacked, unfused) parameters.
    emb = p["embed"][tokens]                                          # (S, E)
    h = jnp.zeros((1, EMBED), jnp.float32)
    for t in range(SEQ):
        h = jnp.tanh(emb[t:t + 1] @ p["wif"] + h @ p["whf"] + p["bf"])
    hb = jnp.zeros((1, EMBED), jnp.float32)
    for t in range(SEQ - 1, -1, -1):
        hb = jnp.tanh(emb[t:t + 1] @ p["wib"] + hb @ p["whb"] + p["bb"])
    hcat = jnp.concatenate([h, hb], axis=-1)
    z1 = hcat @ p["w1"] + p["b1"]
    return jnp.tanh(z1 @ p["w2"] + p["b2"])


if __name__ == "__main__":
    key = jax.random.PRNGKey(0)
    k_tok, k_par = jax.random.split(key)
    tokens = jax.random.randint(k_tok, (SEQ,), 0, VOCAB, dtype=jnp.int32)
    params = init_params(k_par)
    packed = pack_params(params)

    out = bidirectional_rnn_forward(tokens, packed)
    out = jax.block_until_ready(out)

    ref = reference_forward(tokens, params)
    assert out.shape == (1, VOCAB)
    assert jnp.allclose(out, ref, atol=1e-5, rtol=1e-5), (
        "max abs diff = %s" % jnp.max(jnp.abs(out - ref)))
    print("KERNEL_OK")
</pallas_src>

<mosaic_0001>
module attributes {stable_mosaic.version = 11 : i64} {
  func.func @birnn_kernel(%arg0: memref<8x1xi32, #tpu.memory_space<vmem>>, %arg1: memref<16x64xf32, #tpu.memory_space<vmem>>, %arg2: memref<1x64xf32, #tpu.memory_space<vmem>>, %arg3: memref<64x64xf32, #tpu.memory_space<vmem>>, %arg4: memref<64x16xf32, #tpu.memory_space<vmem>>, %arg5: memref<1x16xf32, #tpu.memory_space<vmem>>, %arg6: memref<1x16xf32, #tpu.memory_space<vmem>>) attributes {dimension_semantics = [], scalar_prefetch = 0 : i64, scratch_operands = 0 : i64, tpu.core_type = #tpu.core_type<tc>} {
    %c0 = arith.constant 0 : index
    %c0_0 = arith.constant 0 : index
    %0 = vector.load %arg0[%c0, %c0_0] : memref<8x1xi32, #tpu.memory_space<vmem>>, vector<8x1xi32>
    %1 = tpu.iota {dimensions = array<i32: 1>} : vector<8x16xi32>
    %2 = vector.broadcast %0 : vector<8x1xi32> to vector<8x16xi32>
    %3 = arith.cmpi eq, %2, %1 : vector<8x16xi32>
    %4 = arith.extui %3 : vector<8x16xi1> to vector<8x16xi32>
    %5 = arith.sitofp %4 : vector<8x16xi32> to vector<8x16xf32>
    %c0_1 = arith.constant 0 : index
    %c0_2 = arith.constant 0 : index
    %6 = vector.load %arg1[%c0_1, %c0_2] : memref<16x64xf32, #tpu.memory_space<vmem>>, vector<16x64xf32>
    %cst = arith.constant dense<0.000000e+00> : vector<8x64xf32>
    %7 = tpu.matmul %5, %6, %cst {dimension_numbers = #tpu.dot_dimension_numbers<[1], [0], [0], [1], [0, 0, 1, 1], [], []>} : vector<8x16xf32>, vector<16x64xf32>, vector<8x64xf32> -> vector<8x64xf32>
    %c0_3 = arith.constant 0 : index
    %c0_4 = arith.constant 0 : index
    %8 = vector.load %arg2[%c0_3, %c0_4] : memref<1x64xf32, #tpu.memory_space<vmem>>, vector<1x64xf32>
    %9 = vector.broadcast %8 : vector<1x64xf32> to vector<8x64xf32>
    %10 = arith.addf %7, %9 : vector<8x64xf32>
    %c0_5 = arith.constant 0 : index
    %c0_6 = arith.constant 0 : index
    %11 = vector.load %arg3[%c0_5, %c0_6] : memref<64x64xf32, #tpu.memory_space<vmem>>, vector<64x64xf32>
    %12 = tpu.iota {dimensions = array<i32: 1>} : vector<1x64xi32>
    %c32_i32 = arith.constant 32 : i32
    %13 = vector.broadcast %c32_i32 : i32 to vector<1x64xi32>
    %14 = arith.cmpi slt, %12, %13 : vector<1x64xi32>
    %cst_7 = arith.constant 0.000000e+00 : f32
    %15 = vector.broadcast %cst_7 : f32 to vector<1x64xf32>
    %16 = vector.extract_strided_slice %10 {offsets = [0, 0], sizes = [1, 64], strides = [1, 1]} : vector<8x64xf32> to vector<1x64xf32>
    %17 = vector.extract_strided_slice %10 {offsets = [7, 0], sizes = [1, 64], strides = [1, 1]} : vector<8x64xf32> to vector<1x64xf32>
    %18 = arith.select %14, %16, %17 : vector<1x64xi1>, vector<1x64xf32>
    %cst_8 = arith.constant dense<0.000000e+00> : vector<1x64xf32>
    %19 = tpu.matmul %15, %11, %cst_8 {dimension_numbers = #tpu.dot_dimension_numbers<[1], [0], [0], [1], [0, 0, 1, 1], [], []>} : vector<1x64xf32>, vector<64x64xf32>, vector<1x64xf32> -> vector<1x64xf32>
    %20 = arith.addf %19, %18 : vector<1x64xf32>
    %21 = math.tanh %20 : vector<1x64xf32>
    %22 = vector.extract_strided_slice %10 {offsets = [1, 0], sizes = [1, 64], strides = [1, 1]} : vector<8x64xf32> to vector<1x64xf32>
    %23 = vector.extract_strided_slice %10 {offsets = [6, 0], sizes = [1, 64], strides = [1, 1]} : vector<8x64xf32> to vector<1x64xf32>
    %24 = arith.select %14, %22, %23 : vector<1x64xi1>, vector<1x64xf32>
    %cst_9 = arith.constant dense<0.000000e+00> : vector<1x64xf32>
    %25 = tpu.matmul %21, %11, %cst_9 {dimension_numbers = #tpu.dot_dimension_numbers<[1], [0], [0], [1], [0, 0, 1, 1], [], []>} : vector<1x64xf32>, vector<64x64xf32>, vector<1x64xf32> -> vector<1x64xf32>
    %26 = arith.addf %25, %24 : vector<1x64xf32>
    %27 = math.tanh %26 : vector<1x64xf32>
    %28 = vector.extract_strided_slice %10 {offsets = [2, 0], sizes = [1, 64], strides = [1, 1]} : vector<8x64xf32> to vector<1x64xf32>
    %29 = vector.extract_strided_slice %10 {offsets = [5, 0], sizes = [1, 64], strides = [1, 1]} : vector<8x64xf32> to vector<1x64xf32>
    %30 = arith.select %14, %28, %29 : vector<1x64xi1>, vector<1x64xf32>
    %cst_10 = arith.constant dense<0.000000e+00> : vector<1x64xf32>
    %31 = tpu.matmul %27, %11, %cst_10 {dimension_numbers = #tpu.dot_dimension_numbers<[1], [0], [0], [1], [0, 0, 1, 1], [], []>} : vector<1x64xf32>, vector<64x64xf32>, vector<1x64xf32> -> vector<1x64xf32>
    %32 = arith.addf %31, %30 : vector<1x64xf32>
    %33 = math.tanh %32 : vector<1x64xf32>
    %34 = vector.extract_strided_slice %10 {offsets = [3, 0], sizes = [1, 64], strides = [1, 1]} : vector<8x64xf32> to vector<1x64xf32>
    %35 = vector.extract_strided_slice %10 {offsets = [4, 0], sizes = [1, 64], strides = [1, 1]} : vector<8x64xf32> to vector<1x64xf32>
    %36 = arith.select %14, %34, %35 : vector<1x64xi1>, vector<1x64xf32>
    %cst_11 = arith.constant dense<0.000000e+00> : vector<1x64xf32>
    %37 = tpu.matmul %33, %11, %cst_11 {dimension_numbers = #tpu.dot_dimension_numbers<[1], [0], [0], [1], [0, 0, 1, 1], [], []>} : vector<1x64xf32>, vector<64x64xf32>, vector<1x64xf32> -> vector<1x64xf32>
    %38 = arith.addf %37, %36 : vector<1x64xf32>
    %39 = math.tanh %38 : vector<1x64xf32>
    %40 = vector.extract_strided_slice %10 {offsets = [4, 0], sizes = [1, 64], strides = [1, 1]} : vector<8x64xf32> to vector<1x64xf32>
    %41 = vector.extract_strided_slice %10 {offsets = [3, 0], sizes = [1, 64], strides = [1, 1]} : vector<8x64xf32> to vector<1x64xf32>
    %42 = arith.select %14, %40, %41 : vector<1x64xi1>, vector<1x64xf32>
    %cst_12 = arith.constant dense<0.000000e+00> : vector<1x64xf32>
    %43 = tpu.matmul %39, %11, %cst_12 {dimension_numbers = #tpu.dot_dimension_numbers<[1], [0], [0], [1], [0, 0, 1, 1], [], []>} : vector<1x64xf32>, vector<64x64xf32>, vector<1x64xf32> -> vector<1x64xf32>
    %44 = arith.addf %43, %42 : vector<1x64xf32>
    %45 = math.tanh %44 : vector<1x64xf32>
    %46 = vector.extract_strided_slice %10 {offsets = [5, 0], sizes = [1, 64], strides = [1, 1]} : vector<8x64xf32> to vector<1x64xf32>
    %47 = vector.extract_strided_slice %10 {offsets = [2, 0], sizes = [1, 64], strides = [1, 1]} : vector<8x64xf32> to vector<1x64xf32>
    %48 = arith.select %14, %46, %47 : vector<1x64xi1>, vector<1x64xf32>
    %cst_13 = arith.constant dense<0.000000e+00> : vector<1x64xf32>
    %49 = tpu.matmul %45, %11, %cst_13 {dimension_numbers = #tpu.dot_dimension_numbers<[1], [0], [0], [1], [0, 0, 1, 1], [], []>} : vector<1x64xf32>, vector<64x64xf32>, vector<1x64xf32> -> vector<1x64xf32>
    %50 = arith.addf %49, %48 : vector<1x64xf32>
    %51 = math.tanh %50 : vector<1x64xf32>
    %52 = vector.extract_strided_slice %10 {offsets = [6, 0], sizes = [1, 64], strides = [1, 1]} : vector<8x64xf32> to vector<1x64xf32>
    %53 = vector.extract_strided_slice %10 {offsets = [1, 0], sizes = [1, 64], strides = [1, 1]} : vector<8x64xf32> to vector<1x64xf32>
    %54 = arith.select %14, %52, %53 : vector<1x64xi1>, vector<1x64xf32>
    %cst_14 = arith.constant dense<0.000000e+00> : vector<1x64xf32>
    %55 = tpu.matmul %51, %11, %cst_14 {dimension_numbers = #tpu.dot_dimension_numbers<[1], [0], [0], [1], [0, 0, 1, 1], [], []>} : vector<1x64xf32>, vector<64x64xf32>, vector<1x64xf32> -> vector<1x64xf32>
    %56 = arith.addf %55, %54 : vector<1x64xf32>
    %57 = math.tanh %56 : vector<1x64xf32>
    %58 = vector.extract_strided_slice %10 {offsets = [7, 0], sizes = [1, 64], strides = [1, 1]} : vector<8x64xf32> to vector<1x64xf32>
    %59 = vector.extract_strided_slice %10 {offsets = [0, 0], sizes = [1, 64], strides = [1, 1]} : vector<8x64xf32> to vector<1x64xf32>
    %60 = arith.select %14, %58, %59 : vector<1x64xi1>, vector<1x64xf32>
    %cst_15 = arith.constant dense<0.000000e+00> : vector<1x64xf32>
    %61 = tpu.matmul %57, %11, %cst_15 {dimension_numbers = #tpu.dot_dimension_numbers<[1], [0], [0], [1], [0, 0, 1, 1], [], []>} : vector<1x64xf32>, vector<64x64xf32>, vector<1x64xf32> -> vector<1x64xf32>
    %62 = arith.addf %61, %60 : vector<1x64xf32>
    %63 = math.tanh %62 : vector<1x64xf32>
    %c0_16 = arith.constant 0 : index
    %c0_17 = arith.constant 0 : index
    %64 = vector.load %arg4[%c0_16, %c0_17] : memref<64x16xf32, #tpu.memory_space<vmem>>, vector<64x16xf32>
    %cst_18 = arith.constant dense<0.000000e+00> : vector<1x16xf32>
    %65 = tpu.matmul %63, %64, %cst_18 {dimension_numbers = #tpu.dot_dimension_numbers<[1], [0], [0], [1], [0, 0, 1, 1], [], []>} : vector<1x64xf32>, vector<64x16xf32>, vector<1x16xf32> -> vector<1x16xf32>
    %c0_19 = arith.constant 0 : index
    %c0_20 = arith.constant 0 : index
    %66 = vector.load %arg5[%c0_19, %c0_20] : memref<1x16xf32, #tpu.memory_space<vmem>>, vector<1x16xf32>
    %67 = arith.addf %65, %66 : vector<1x16xf32>
    %68 = math.tanh %67 : vector<1x16xf32>
    %c0_21 = arith.constant 0 : index
    %c0_22 = arith.constant 0 : index
    %69 = vector.load %arg6[%c0_21, %c0_22] : memref<1x16xf32, #tpu.memory_space<vmem>>, vector<1x16xf32>
    tpu.vector_store %arg6[%c0_21, %c0_22], %68 {strides = array<i32>} : memref<1x16xf32, #tpu.memory_space<vmem>>, vector<1x16xf32>,
    return
  }
}

</mosaic_0001>

<bundles_post_ra>
// kernel: bidirectional_rnn_forward.1
= control target key start
LH: loop header
LB: loop body
LE: loop exit
PB: predicated region body
PF: predicated region fallthrough
CT: control target
= control target key end

     0   :  { %v1166_v2 = vmov 0   ;;  %v1167_v3 = vmov 0.0   ;;  %s1471_s0 = inlined_call_operand.vmem [shape: s32[8,1], index: 0, kind: input, shape index: {}]   ;;  %s1472_s1 = inlined_call_operand.vmem [shape: f32[16,64], index: 1, kind: input, shape index: {}]   ;;  %s1473_s2 = inlined_call_operand.vmem [shape: f32[1,64], index: 2, kind: input, shape index: {}]   ;;  %s1474_s3 = inlined_call_operand.vmem [shape: f32[64,64], index: 3, kind: input, shape index: {}]   ;;  %s1475_s4 = inlined_call_operand.vmem [shape: f32[64,16], index: 4, kind: input, shape index: {}]   ;;  %s1476_s5 = inlined_call_operand.vmem [shape: f32[1,16], index: 5, kind: input, shape index: {}]   ;;  %s1477_s6 = inlined_call_operand.hbm [shape: f32[1,16], index: 6, kind: output, shape index: {}]  }
   0x1   :  { %v24_v0 = vld [vmem:[%s1471_s0] sm:$0xff]  ;;  %v1211_v1 = vld [vmem:[%s1474_s3 + $0x38] sm:$0xff]  ;;  %1125 = vset.pattern.permute.xlu0 %v1166_v2  ;;  %950 = vmatprep.subr.mxu1 %v1167_v3  ;;  %v1217_v4 = vld [vmem:[%s1474_s3 + $0x30] sm:$0xff] }
   0x2   :  { %28 = vperm.xlu0 %1125, %v24_v0   ;;  %951 = vmatpush3.msra.mxu1 %v1211_v1  ;;  %v34_v5 = vld [vmem:[%s1472_s1 + $0x8] sm:$0xff]  ;;  %v33_v7 = vld [vmem:[%s1472_s1] sm:$0xff] }
   0x3   :  { %952 = vmatprep.subr.mxu1 %v1167_v3  ;;  %v1227_v6 = vld [vmem:[%s1474_s3 + $0x28] sm:$0xff]  ;;  %943 = vmatprep.subr.mxu0 %v1167_v3 }
   0x4   :  { %953 = vmatpush3.msra.mxu1 %v1217_v4  ;;  %944 = vmatpush3.msra.mxu0 %v34_v5 }
   0x5   :  { %11 = vsyncpa [#allocation3], 0  ;;  %954 = vmatprep.subr.mxu1 %v1167_v3  ;;  %v1238_v8 = vld [vmem:[%s1474_s3 + $0x20] sm:$0xff]  ;;  %945 = vmatprep.subr.mxu0 %v1167_v3  ;;  %v1246_v9 = vld [vmem:[%s1474_s3 + $0x18] sm:$0xff]  ;;  %vm1168_vm0 = vmmov 0   ;;  %v25_v13 = vlaneseq  ;;  %vm42_vm1 = vcmask 130048  }
   0x6   :  { %955 = vmatpush3.msra.mxu1 %v1227_v6  ;;  %946 = vmatpush3.msra.mxu0 %v33_v7  ;;  %v1257_v10 = vld [vmem:[%s1474_s3 + $0x10] sm:$0xff]  ;;  %v1265_v11 = vld [vmem:[%s1474_s3 + $0x8] sm:$0xff]  ;;  %v1272_v12 = vld [vmem:[%s1474_s3] sm:$0xff]  ;;  %vm129_vm4 = vcmask 523264   ;;  %vm832_vm5 = vcmask 122880  }
   0x7   :  { %956 = vmatprep.subr.mxu1 %v1167_v3  ;;  %947 = vmatprep.mubr.msk.f32.mxu0 %vm1168_vm0, %v1167_v3  ;;  %v26_v14 = vand.u32 127, %v25_v13  ;;  %v849_v19 = vld [vmem:[%s1473_s2] ss:$0 sm:$0xff]  ;;  %v756_v63 = vld [vmem:[%s1475_s4 + $0x38] sm:$0xff]  ;;  %v755_v0 = vld [vmem:[%s1475_s4 + $0x30] sm:$0xff] }
   0x8   :  { %957 = vmatpush3.msra.mxu1 %v1238_v8  ;;  %966 = vmatprep.mubr.msk.f32.mxu1 %vm1168_vm0, %v1167_v3  ;;  %v753_v2 = vld [vmem:[%s1475_s4 + $0x20] sm:$0xff]  ;;  %v751_v5 = vld [vmem:[%s1475_s4 + $0x10] sm:$0xff] }
   0x9   :  { %958 = vmatprep.subr.mxu1 %v1167_v3  ;;  %969 = vmatprep.subr.mxu0 %v1167_v3  ;;  %vm124_vm3 = vcmp.lt.s32.totalorder %v26_v14, 32  ;;  %v749_v7 = vld [vmem:[%s1475_s4] sm:$0xff] }
   0xa   :  { %959 = vmatpush3.msra.mxu1 %v1246_v9  ;;  %v757_v13 = vld [vmem:[%s1476_s5] sm:$0x1] }
   0xb   :  { %960 = vmatprep.subr.mxu1 %v1167_v3 }
   0xc   :  { %961 = vmatpush3.msra.mxu1 %v1257_v10 }
   0xd   :  { %962 = vmatprep.subr.mxu1 %v1167_v3 }
   0xe   :  { %963 = vmatpush3.msra.mxu1 %v1265_v11 }
   0xf   :  { %964 = vmatprep.subr.mxu1 %v1167_v3 }
  0x10   :  { %965 = vmatpush3.msra.mxu1 %v1272_v12 }
  0x11   :  { %967 = vmatmul.mubr.f32.vlgmr.msra.gmra.mxu1 %v1167_v3  ;;  %988 = vmatprep.subr.mxu1 %v1167_v3 }
  0x12   :  { %989 = vmatpush3.msra.mxu1 %v1211_v1  ;;  %1004 = vmatprep.mubr.msk.f32.mxu1 %vm1168_vm0, %v1167_v3 }
  0x13   :  { %990 = vmatprep.subr.mxu1 %v1167_v3 }
  0x14   :  { %991 = vmatpush3.msra.mxu1 %v1217_v4 }
  0x15   :  { %992 = vmatprep.subr.mxu1 %v1167_v3 }
  0x16   :  { %993 = vmatpush3.msra.mxu1 %v1227_v6 }
  0x17   :  { %994 = vmatprep.subr.mxu1 %v1167_v3 }
  0x18   :  { %995 = vmatpush3.msra.mxu1 %v1238_v8 }
  0x19   :  { %996 = vmatprep.subr.mxu1 %v1167_v3 }
  0x1a   :  { %997 = vmatpush3.msra.mxu1 %v1246_v9 }
  0x1b   :  { %998 = vmatprep.subr.mxu1 %v1167_v3 }
  0x1c   :  { %999 = vmatpush3.msra.mxu1 %v1257_v10 }
  0x1d   :  { %1000 = vmatprep.subr.mxu1 %v1167_v3 }
  0x1e   :  { %1001 = vmatpush3.msra.mxu1 %v1265_v11 }
  0x1f   :  { %1002 = vmatprep.subr.mxu1 %v1167_v3 }
  0x20   :  { %1003 = vmatpush3.msra.mxu1 %v1272_v12 }
  0x21   :  { %1026 = vmatprep.subr.mxu1 %v1167_v3 }
  0x7d   :  { %v29_v15 = vpop.permute.xlu0 %28 }
  0x7e   :  { %vm30_vm2 = vcmp.eq.s32.totalorder %v29_v15, %v26_v14 }
  0x7f   :  { %v848_v16 = vsel %vm30_vm2, 1.0, %v1167_v3 }
  0x80   :  { %948 = vmatmul.mubr.msk.f32.vlgmr.msra.gmra.mxu0 %vm42_vm1, %v848_v16 }
  0x81   :  { %970 = vmatpush3.msra.mxu0 %v1211_v1  ;;  %985 = vmatprep.mubr.msk.f32.mxu0 %vm1168_vm0, %v1167_v3 }
  0x82   :  { %971 = vmatprep.subr.mxu0 %v1167_v3 }
  0x83   :  { %972 = vmatpush3.msra.mxu0 %v1217_v4 }
  0x84   :  { %973 = vmatprep.subr.mxu0 %v1167_v3 }
  0x85   :  { %974 = vmatpush3.msra.mxu0 %v1227_v6 }
  0x86   :  { %975 = vmatprep.subr.mxu0 %v1167_v3 }
  0x87   :  { %976 = vmatpush3.msra.mxu0 %v1238_v8 }
  0x88   :  { %977 = vmatprep.subr.mxu0 %v1167_v3 }
  0x89   :  { %978 = vmatpush3.msra.mxu0 %v1246_v9 }
  0x8a   :  { %979 = vmatprep.subr.mxu0 %v1167_v3 }
  0x8b   :  { %980 = vmatpush3.msra.mxu0 %v1257_v10 }
  0x8c   :  { %981 = vmatprep.subr.mxu0 %v1167_v3 }
  0x8d   :  { %982 = vmatpush3.msra.mxu0 %v1265_v11 }
  0x8e   :  { %983 = vmatprep.subr.mxu0 %v1167_v3 }
  0x8f   :  { %984 = vmatpush3.msra.mxu0 %v1272_v12 }
  0x90   :  { %1007 = vmatprep.subr.mxu0 %v1167_v3 }
  0xd1   :  { %v199_v17 = vpop.f32.mrf.mxu1 }
  0xd3   :  { %v968_v18 = vpop.f32.mrf.mxu1 }
 0x140   :  { %v112_v20 = vpop.f32.mrf.mxu0 }
 0x141   :  { %v113_v21 = vadd.f32 %v849_v19, %v112_v20 }
 0x142   :  { %v949_v22 = vpop.f32.mrf.mxu0 }
 0x143   :  { %v126_v23 = vrot.slane %v113_v21, 7  ;;  %v204_v24 = vrot.slane %v113_v21, 5  ;;  %v284_v25 = vrot.slane %v113_v21, 3  ;;  %v364_v26 = vrot.slane %v113_v21, 1 }
 0x145   :  { %v1319_v27 = vsel %vm124_vm3, %v113_v21, %v126_v23  ;;  %v1321_v28 = vsel %vm124_vm3, %v113_v21, %v204_v24  ;;  %v1323_v29 = vsel %vm124_vm3, %v113_v21, %v284_v25  ;;  %v1325_v30 = vsel %vm124_vm3, %v113_v21, %v364_v26 }
 0x146   :  { %v200_v31 = vadd.f32 %v199_v17, %v1319_v27  ;;  %v208_v33 = vrot.slane %v1321_v28, 1  ;;  %v288_v38 = vrot.slane %v1323_v29, 2  ;;  %v368_v43 = vrot.slane %v1325_v30, 3 }
 0x147   :  { %v445_v48 = vrot.slane %v1319_v27, 4  ;;  %v521_v53 = vrot.slane %v1321_v28, 5  ;;  %v597_v58 = vrot.slane %v1323_v29, 6 }
 0x148   :  { %1126 = vtanh.f32 %v200_v31 }
 0x155   :  { %v1127_v32 = vpop.eup %1126 }
 0x156   :  { %986 = vmatmul.mubr.msk.f32.vlgmr.msra.gmra.mxu0 %vm129_vm4, %v1127_v32 }
 0x157   :  { %1008 = vmatpush3.msra.mxu0 %v1211_v1  ;;  %1023 = vmatprep.mubr.msk.f32.mxu0 %vm1168_vm0, %v1167_v3 }
 0x158   :  { %1009 = vmatprep.subr.mxu0 %v1167_v3 }
 0x159   :  { %1010 = vmatpush3.msra.mxu0 %v1217_v4 }
 0x15a   :  { %1011 = vmatprep.subr.mxu0 %v1167_v3 }
 0x15b   :  { %1012 = vmatpush3.msra.mxu0 %v1227_v6 }
 0x15c   :  { %1013 = vmatprep.subr.mxu0 %v1167_v3 }
 0x15d   :  { %1014 = vmatpush3.msra.mxu0 %v1238_v8 }
 0x15e   :  { %1015 = vmatprep.subr.mxu0 %v1167_v3 }
 0x15f   :  { %1016 = vmatpush3.msra.mxu0 %v1246_v9 }
 0x160   :  { %1017 = vmatprep.subr.mxu0 %v1167_v3 }
 0x161   :  { %1018 = vmatpush3.msra.mxu0 %v1257_v10 }
 0x162   :  { %1019 = vmatprep.subr.mxu0 %v1167_v3 }
 0x163   :  { %1020 = vmatpush3.msra.mxu0 %v1265_v11 }
 0x164   :  { %1021 = vmatprep.subr.mxu0 %v1167_v3 }
 0x165   :  { %1022 = vmatpush3.msra.mxu0 %v1272_v12 }
 0x166   :  { %1045 = vmatprep.subr.mxu0 %v1167_v3 }
 0x216   :  { %v279_v34 = vpop.f32.mrf.mxu0 }
 0x217   :  { %v280_v35 = vadd.f32 %v279_v34, %v208_v33 }
 0x218   :  { %v987_v36 = vpop.f32.mrf.mxu0 }
 0x219   :  { %1128 = vtanh.f32 %v280_v35 }
 0x226   :  { %v1129_v37 = vpop.eup %1128 }
 0x227   :  { %1005 = vmatmul.mubr.msk.f32.vlgmr.msra.gmra.mxu1 %vm129_vm4, %v1129_v37 }
 0x228   :  { %1027 = vmatpush3.msra.mxu1 %v1211_v1  ;;  %1042 = vmatprep.mubr.msk.f32.mxu1 %vm1168_vm0, %v1167_v3 }
 0x229   :  { %1028 = vmatprep.subr.mxu1 %v1167_v3 }
 0x22a   :  { %1029 = vmatpush3.msra.mxu1 %v1217_v4 }
 0x22b   :  { %1030 = vmatprep.subr.mxu1 %v1167_v3 }
 0x22c   :  { %1031 = vmatpush3.msra.mxu1 %v1227_v6 }
 0x22d   :  { %1032 = vmatprep.subr.mxu1 %v1167_v3 }
 0x22e   :  { %1033 = vmatpush3.msra.mxu1 %v1238_v8 }
 0x22f   :  { %1034 = vmatprep.subr.mxu1 %v1167_v3 }
 0x230   :  { %1035 = vmatpush3.msra.mxu1 %v1246_v9 }
 0x231   :  { %1036 = vmatprep.subr.mxu1 %v1167_v3 }
 0x232   :  { %1037 = vmatpush3.msra.mxu1 %v1257_v10 }
 0x233   :  { %1038 = vmatprep.subr.mxu1 %v1167_v3 }
 0x234   :  { %1039 = vmatpush3.msra.mxu1 %v1265_v11 }
 0x235   :  { %1040 = vmatprep.subr.mxu1 %v1167_v3 }
 0x236   :  { %1041 = vmatpush3.msra.mxu1 %v1272_v12 }
 0x237   :  { %1064 = vmatprep.subr.mxu1 %v1167_v3 }
 0x2e7   :  { %v359_v39 = vpop.f32.mrf.mxu1 }
 0x2e8   :  { %v360_v40 = vadd.f32 %v359_v39, %v288_v38 }
 0x2e9   :  { %v1006_v41 = vpop.f32.mrf.mxu1 }
 0x2ea   :  { %1130 = vtanh.f32 %v360_v40 }
 0x2f7   :  { %v1131_v42 = vpop.eup %1130 }
 0x2f8   :  { %1024 = vmatmul.mubr.msk.f32.vlgmr.msra.gmra.mxu0 %vm129_vm4, %v1131_v42 }
 0x2f9   :  { %1046 = vmatpush3.msra.mxu0 %v1211_v1  ;;  %1061 = vmatprep.mubr.msk.f32.mxu0 %vm1168_vm0, %v1167_v3 }
 0x2fa   :  { %1047 = vmatprep.subr.mxu0 %v1167_v3 }
 0x2fb   :  { %1048 = vmatpush3.msra.mxu0 %v1217_v4 }
 0x2fc   :  { %1049 = vmatprep.subr.mxu0 %v1167_v3 }
 0x2fd   :  { %1050 = vmatpush3.msra.mxu0 %v1227_v6 }
 0x2fe   :  { %1051 = vmatprep.subr.mxu0 %v1167_v3 }
 0x2ff   :  { %1052 = vmatpush3.msra.mxu0 %v1238_v8 }
 0x300   :  { %1053 = vmatprep.subr.mxu0 %v1167_v3 }
 0x301   :  { %1054 = vmatpush3.msra.mxu0 %v1246_v9 }
 0x302   :  { %1055 = vmatprep.subr.mxu0 %v1167_v3 }
 0x303   :  { %1056 = vmatpush3.msra.mxu0 %v1257_v10 }
 0x304   :  { %1057 = vmatprep.subr.mxu0 %v1167_v3 }
 0x305   :  { %1058 = vmatpush3.msra.mxu0 %v1265_v11 }
 0x306   :  { %1059 = vmatprep.subr.mxu0 %v1167_v3 }
 0x307   :  { %1060 = vmatpush3.msra.mxu0 %v1272_v12 }
 0x308   :  { %1083 = vmatprep.subr.mxu0 %v1167_v3 }
 0x3b8   :  { %v439_v44 = vpop.f32.mrf.mxu0 }
 0x3b9   :  { %v440_v45 = vadd.f32 %v439_v44, %v368_v43 }
 0x3ba   :  { %v1025_v46 = vpop.f32.mrf.mxu0 }
 0x3bb   :  { %1132 = vtanh.f32 %v440_v45 }
 0x3c8   :  { %v1133_v47 = vpop.eup %1132 }
 0x3c9   :  { %1043 = vmatmul.mubr.msk.f32.vlgmr.msra.gmra.mxu1 %vm129_vm4, %v1133_v47 }
 0x3ca   :  { %1065 = vmatpush3.msra.mxu1 %v1211_v1  ;;  %1080 = vmatprep.mubr.msk.f32.mxu1 %vm1168_vm0, %v1167_v3 }
 0x3cb   :  { %1066 = vmatprep.subr.mxu1 %v1167_v3 }
 0x3cc   :  { %1067 = vmatpush3.msra.mxu1 %v1217_v4 }
 0x3cd   :  { %1068 = vmatprep.subr.mxu1 %v1167_v3 }
 0x3ce   :  { %1069 = vmatpush3.msra.mxu1 %v1227_v6 }
 0x3cf   :  { %1070 = vmatprep.subr.mxu1 %v1167_v3 }
 0x3d0   :  { %1071 = vmatpush3.msra.mxu1 %v1238_v8 }
 0x3d1   :  { %1072 = vmatprep.subr.mxu1 %v1167_v3 }
 0x3d2   :  { %1073 = vmatpush3.msra.mxu1 %v1246_v9 }
 0x3d3   :  { %1074 = vmatprep.subr.mxu1 %v1167_v3 }
 0x3d4   :  { %1075 = vmatpush3.msra.mxu1 %v1257_v10 }
 0x3d5   :  { %1076 = vmatprep.subr.mxu1 %v1167_v3 }
 0x3d6   :  { %1077 = vmatpush3.msra.mxu1 %v1265_v11 }
 0x3d7   :  { %1078 = vmatprep.subr.mxu1 %v1167_v3 }
 0x3d8   :  { %1079 = vmatpush3.msra.mxu1 %v1272_v12 }
 0x3d9   :  { %1102 = vmatprep.subr.mxu1 %v1167_v3 }
 0x489   :  { %v516_v49 = vpop.f32.mrf.mxu1 }
 0x48a   :  { %v517_v50 = vadd.f32 %v516_v49, %v445_v48 }
 0x48b   :  { %v1044_v51 = vpop.f32.mrf.mxu1 }
 0x48c   :  { %1134 = vtanh.f32 %v517_v50 }
 0x499   :  { %v1135_v52 = vpop.eup %1134 }
 0x49a   :  { %1062 = vmatmul.mubr.msk.f32.vlgmr.msra.gmra.mxu0 %vm129_vm4, %v1135_v52 }
 0x49b   :  { %1084 = vmatpush3.msra.mxu0 %v1211_v1  ;;  %1099 = vmatprep.mubr.msk.f32.mxu0 %vm1168_vm0, %v1167_v3  ;;  %v754_v1 = vld [vmem:[%s1475_s4 + $0x28] sm:$0xff] }
 0x49c   :  { %1085 = vmatprep.subr.mxu0 %v1167_v3 }
 0x49d   :  { %1086 = vmatpush3.msra.mxu0 %v1217_v4  ;;  %v752_v4 = vld [vmem:[%s1475_s4 + $0x18] sm:$0xff] }
 0x49e   :  { %1087 = vmatprep.subr.mxu0 %v1167_v3 }
 0x49f   :  { %1088 = vmatpush3.msra.mxu0 %v1227_v6  ;;  %v750_v6 = vld [vmem:[%s1475_s4 + $0x8] sm:$0xff]  ;;  %s1169_s4 = smov [#allocation2]  }
 0x4a0   :  { %1089 = vmatprep.subr.mxu0 %v1167_v3  ;;  %s840_s10 = sshll.u32 %s1169_s4, 4  ;;  %s841_s10 = int_to_ptr.vmem [resolvable:$true] %s840_s10 }
 0x4a1   :  { %1090 = vmatpush3.msra.mxu0 %v1238_v8  ;;  %v673_v8 = vrot.slane %v1325_v30, 7  ;;  %s1144_s1 = scalar_lea.vmem %s841_s10, 16  ;;  %s1148_s11 = scalar_lea.vmem %s841_s10, 32 }
 0x4a2   :  { %1091 = vmatprep.subr.mxu0 %v1167_v3  ;;  %p1145_p0 = scmp.ne.s32.totalorder %s841_s10, %s1144_s1  ;;  %p1149_p1 = scmp.lt.s32.totalorder %s841_s10, %s841_s10 }
 0x4a3   :  { %1092 = vmatpush3.msra.mxu0 %v1246_v9  ;;  %p1150_p2 = scmp.lt.s32.totalorder %s1148_s11, %s1144_s1 }
 0x4a4   :  { %1093 = vmatprep.subr.mxu0 %v1167_v3 }
 0x4a5   :  { %1094 = vmatpush3.msra.mxu0 %v1257_v10  ;;  %p1151_p3 = por %p1150_p2, %p1149_p1 }
 0x4a6   :  { %1095 = vmatprep.subr.mxu0 %v1167_v3 }
 0x4a7   :  { %1096 = vmatpush3.msra.mxu0 %v1265_v11  ;;  %p1152_p4 = pnand %p1151_p3, %p1145_p0 }
 0x4a8   :  { %1097 = vmatprep.subr.mxu0 %v1167_v3 }
 0x4a9   :  { %1098 = vmatpush3.msra.mxu0 %v1272_v12 }
 0x55a   :  { %v592_v54 = vpop.f32.mrf.mxu0 }
 0x55b   :  { %v593_v55 = vadd.f32 %v592_v54, %v521_v53 }
 0x55c   :  { %v1063_v56 = vpop.f32.mrf.mxu0 }
 0x55d   :  { %1136 = vtanh.f32 %v593_v55 }
 0x56a   :  { %v1137_v57 = vpop.eup %1136 }
 0x56b   :  { %1081 = vmatmul.mubr.msk.f32.vlgmr.msra.gmra.mxu1 %vm129_vm4, %v1137_v57 }
 0x56c   :  { %1118 = vmatprep.mubr.msk.f32.mxu1 %vm1168_vm0, %v1167_v3  ;;  %1103 = vmatpush3.msra.mxu1 %v756_v63 }
 0x56d   :  { %1104 = vmatprep.subr.mxu1 %v1167_v3 }
 0x56e   :  { %1105 = vmatpush3.msra.mxu1 %v755_v0 }
 0x56f   :  { %1106 = vmatprep.subr.mxu1 %v1167_v3 }
 0x570   :  { %1107 = vmatpush3.msra.mxu1 %v754_v1 }
 0x571   :  { %1108 = vmatprep.subr.mxu1 %v1167_v3 }
 0x572   :  { %1109 = vmatpush3.msra.mxu1 %v753_v2 }
 0x573   :  { %1110 = vmatprep.subr.mxu1 %v1167_v3 }
 0x574   :  { %1111 = vmatpush3.msra.mxu1 %v752_v4 }
 0x575   :  { %1112 = vmatprep.subr.mxu1 %v1167_v3 }
 0x576   :  { %1113 = vmatpush3.msra.mxu1 %v751_v5 }
 0x577   :  { %1114 = vmatprep.subr.mxu1 %v1167_v3 }
 0x578   :  { %1115 = vmatpush3.msra.mxu1 %v750_v6 }
 0x579   :  { %1116 = vmatprep.subr.mxu1 %v1167_v3 }
 0x57a   :  { %1117 = vmatpush3.msra.mxu1 %v749_v7 }
 0x62b   :  { %v668_v59 = vpop.f32.mrf.mxu1 }
 0x62c   :  { %v669_v60 = vadd.f32 %v668_v59, %v597_v58 }
 0x62d   :  { %v1082_v61 = vpop.f32.mrf.mxu1 }
 0x62e   :  { %1138 = vtanh.f32 %v669_v60 }
 0x63b   :  { %v1139_v62 = vpop.eup %1138 }
 0x63c   :  { %1100 = vmatmul.mubr.msk.f32.vlgmr.msra.gmra.mxu0 %vm129_vm4, %v1139_v62 }
 0x6fc   :  { %v744_v9 = vpop.f32.mrf.mxu0 }
 0x6fd   :  { %v745_v10 = vadd.f32 %v744_v9, %v673_v8 }
 0x6fe   :  { %v1101_v11 = vpop.f32.mrf.mxu0 }
 0x6ff   :  { %1140 = vtanh.f32 %v745_v10 }
 0x70c   :  { %v1141_v12 = vpop.eup %1140 }
 0x70d   :  { %1119 = vmatmul.mubr.msk.f32.vlgmr.msra.gmra.mxu1 %vm129_vm4, %v1141_v12 }
 0x7cd   :  { %v827_v14 = vpop.f32.mrf.mxu1 }
 0x7ce   :  { %v828_v15 = vadd.f32 %v827_v14, %v757_v13 }
 0x7cf   :  { %v1120_v16 = vpop.f32.mrf.mxu1 }
 0x7d0   :  { %1142 = vtanh.f32 %v828_v15 }
 0x7dd   :  { %v1143_v3 = vpop.eup %1142 }
 0x7de   :  { %833 = vst.msk [vmem:[#allocation2] sm:$0x1] %vm832_vm5, %v1143_v3 }
 0x7df   :  { %1155 = shalt.err (!%p1152_p4)
}
 0x7e0   :  { %843 = dma.vmem_to_hbm [thread:$0]  %s841_s10, 16, %s1477_s6, [#allocation3]  }
 0x7e1   :  { %1164 = dma.done.wait [#allocation3], 16  }
 0x7e2   :  { %1165 = vsyncadd [#allocation3], 4294967280 }
 0x7e3   :  { %847 = vsyncpa [#allocation3], 1 }

</bundles_post_ra>
